<compile_context>
chip_gen: v6e
topology: v6e:2x2x1
jax: 0.10.0
libtpu: 0.0.40
codegen_flags: <defaults>
</compile_context>

<pallas_src>
import functools

import jax
import jax.numpy as jnp
from jax.experimental import pallas as pl
from jax.experimental.pallas import tpu as pltpu


def _round_up(x, m):
    return (x + m - 1) // m * m


def _bilinear_rows(coords, H_in, W_in):
    """Per-pixel bilinear corner indices / weights, x & y rows together.

    coords: (2, TP) f32, row 0 = x in [-1,1], row 1 = y in [-1,1].
    Returns (x0, x1, wx0, wx1, y0, y1, wy0, wy1), each of shape (1, TP).
    Semantics: bilinear, padding_mode='border', align_corners=False.
    """
    row = jax.lax.broadcasted_iota(jnp.int32, (2, 1), 0)          # [[0],[1]]
    size_f = jnp.where(row == 0, float(W_in), float(H_in))        # (2, 1)
    limit_f = size_f - 1.0
    limit_i = jnp.where(row == 0, W_in - 1, H_in - 1)             # (2, 1)

    # Unnormalize (align_corners=False) and clamp to the border.
    pix = ((coords + 1.0) * size_f - 1.0) * 0.5
    pix = jnp.clip(pix, 0.0, limit_f)

    p0f = jnp.floor(pix)
    w1 = pix - p0f                     # weight of the "+1" corner
    w0 = 1.0 - w1                      # weight of the floor corner
    p0 = jnp.clip(p0f.astype(jnp.int32), 0, limit_i)
    p1 = jnp.minimum(p0 + 1, limit_i)  # clamped corner; duplicate weights sum
    return (p0[0:1], p1[0:1], w0[0:1], w1[0:1],
            p0[1:2], p1[1:2], w0[1:2], w1[1:2])


def _warp_kernel_separable(m_ref, f_ref, o_ref, *, H_in, W_in, H_pad, C,
                           use_bf16_mxu):
    # m_ref: (1, 2, TP)        sampling grid tile (row 0 = x, row 1 = y)
    # f_ref: (1, C*H_pad, W_in) features, flattened over (C, H); H zero-padded
    # o_ref: (1, C, TP)        output tile
    TP = m_ref.shape[-1]
    coords = m_ref[0].astype(jnp.float32)
    x0, x1, wx0, wx1, y0, y1, wy0, wy1 = _bilinear_rows(coords, H_in, W_in)

    # --- x-interpolation on the MXU: (C*H_pad, W_in) @ Rx(W_in, TP) ---
    iota_x = jax.lax.broadcasted_iota(jnp.int32, (W_in, TP), 0)
    Rx = (jnp.where(iota_x == x0, wx0, 0.0)
          + jnp.where(iota_x == x1, wx1, 0.0))
    fblk = f_ref[0]                                   # bf16 already if fast path
    rhs = Rx.astype(jnp.bfloat16) if use_bf16_mxu else Rx
    tmp = jnp.dot(fblk, rhs, preferred_element_type=jnp.float32)
    tmp = tmp.reshape(C, H_pad, TP)                   # free: H_pad % 8 == 0

    # --- y-interpolation on the VPU: out[c,p] = sum_h Ry[h,p] * tmp[c,h,p] ---
    # Padded rows h >= H_in never match y0/y1 so they get zero weight.
    iota_y = jax.lax.broadcasted_iota(jnp.int32, (H_pad, TP), 0)
    Ry = (jnp.where(iota_y == y0, wy0, 0.0)
          + jnp.where(iota_y == y1, wy1, 0.0))
    out = jnp.sum(tmp * Ry[None, :, :], axis=1)       # (C, TP)
    o_ref[0, :, :] = out.astype(o_ref.dtype)


def _warp_kernel_slab(m_ref, f_ref, o_ref, *, H_in, W_in, W_pad, use_bf16_mxu):
    # Large-C path: out(C, TP) = f(C, K_pad) @ S(K_pad, TP), K_pad = H_in*W_pad.
    TP = m_ref.shape[-1]
    K_pad = H_in * W_pad
    coords = m_ref[0].astype(jnp.float32)
    x0, x1, wx0, wx1, y0, y1, wy0, wy1 = _bilinear_rows(coords, H_in, W_in)

    iota_y = jax.lax.broadcasted_iota(jnp.int32, (H_in, TP), 0)
    Ry = (jnp.where(iota_y == y0, wy0, 0.0)
          + jnp.where(iota_y == y1, wy1, 0.0))
    iota_x = jax.lax.broadcasted_iota(jnp.int32, (W_pad, TP), 0)
    Rx = (jnp.where(iota_x == x0, wx0, 0.0)
          + jnp.where(iota_x == x1, wx1, 0.0))
    # Outer product -> sparse bilinear selection slab.  Padded x columns
    # (w >= W_in) get zero weight; the reshape is free because W_pad % 8 == 0.
    S = (Ry[:, None, :] * Rx[None, :, :]).reshape(K_pad, TP)
    if use_bf16_mxu:
        S = S.astype(jnp.bfloat16)
    out = jnp.dot(f_ref[0], S, preferred_element_type=jnp.float32)
    o_ref[0, :, :] = out.astype(o_ref.dtype)


def _pick_tile_p(P_pad, per_pixel_bytes, *, budget_bytes, max_tp=2048,
                 min_tiles=1):
    """Largest 128-multiple divisor of P_pad whose per-tile VMEM footprint
    fits budget_bytes, capped at max_tp and leaving at least min_tiles tiles."""
    assert P_pad % 128 == 0
    q = P_pad // 128
    cap = min(max_tp // 128,
              max(1, budget_bytes // max(per_pixel_bytes * 128, 1)))
    if min_tiles > 1 and q >= min_tiles:
        cap = min(cap, q // min_tiles)
    cap = max(1, min(cap, q))
    for d in range(cap, 0, -1):
        if q % d == 0:
            return d * 128
    return 128


def warper_conv(f, m, *, tile_p=None, use_bf16_mxu=False, path="auto"):
    """Pallas TPU implementation of WarperConv.forward(f, m)."""
    N, C, H_in, W_in = f.shape
    Nm, two, H_out, W_out = m.shape
    assert N == Nm and two == 2
    out_dtype = f.dtype
    out_itemsize = jnp.dtype(out_dtype).itemsize

    P = H_out * W_out
    P_pad = _round_up(P, 128)
    m_flat = m.reshape(N, 2, P)
    if P_pad != P:
        # Pad with zeros (valid in-range coords); padded pixels are sliced off.
        m_flat = jnp.pad(m_flat, ((0, 0), (0, 0), (0, P_pad - P)))

    if path == "auto":
        # Slab path only pays off once C reaches MXU height.
        path = "slab" if C >= 128 else "separable"

    # bf16 fast path: cast f ONCE here (halves HBM DMA + resident VMEM).
    f_use = f.astype(jnp.bfloat16) if use_bf16_mxu else f
    f_itemsize = jnp.dtype(f_use.dtype).itemsize

    if path == "separable":
        H_pad = _round_up(H_in, 8)
        if H_pad != H_in:
            f_use = jnp.pad(f_use, ((0, 0), (0, 0), (0, H_pad - H_in), (0, 0)))
        f_flat = f_use.reshape(N, C * H_pad, W_in)
        kernel = functools.partial(_warp_kernel_separable, H_in=H_in,
                                   W_in=W_in, H_pad=H_pad, C=C,
                                   use_bf16_mxu=use_bf16_mxu)
        # Per-output-pixel VMEM: tmp (+ y-product temp), Ry/Rx (+ temps),
        # double-buffered m & out blocks.
        per_pixel = (4 * (2 * C * H_pad + 3 * (H_pad + _round_up(W_in, 8)))
                     + 2 * 8 * 4 + 2 * _round_up(C, 8) * out_itemsize)
        f_block_bytes = (_round_up(C * H_pad, 8) * _round_up(W_in, 128)
                         * f_itemsize)
    else:
        W_pad = _round_up(W_in, 8)
        if W_pad != W_in:
            f_use = jnp.pad(f_use, ((0, 0), (0, 0), (0, 0), (0, W_pad - W_in)))
        K_pad = H_in * W_pad
        f_flat = f_use.reshape(N, C, K_pad)
        kernel = functools.partial(_warp_kernel_slab, H_in=H_in, W_in=W_in,
                                   W_pad=W_pad, use_bf16_mxu=use_bf16_mxu)
        per_pixel = (4 * (2 * K_pad + 3 * (H_in + W_pad))
                     + 2 * 8 * 4 + 2 * _round_up(C, 8) * out_itemsize)
        f_block_bytes = (_round_up(C, 8) * _round_up(K_pad, 128) * f_itemsize)

    # --- generation-aware VMEM / tile sizing ---
    VMEM_CEIL = 48 * 1024 * 1024          # safely below v7x's 64 MiB physical
    tile_budget = max(2 * 1024 * 1024,
                      min(10 * 1024 * 1024,
                          VMEM_CEIL - 8 * 1024 * 1024 - 2 * f_block_bytes))
    # Guarantee >= 2 grid tiles when N == 1 so both v7x TensorCores get work.
    min_tiles = 2 if (N == 1 and P_pad >= 256) else 1

    if tile_p is None:
        TP = _pick_tile_p(P_pad, per_pixel, budget_bytes=tile_budget,
                          max_tp=2048, min_tiles=min_tiles)
    else:
        TP = tile_p
    assert TP % 128 == 0 and P_pad % TP == 0, (P, P_pad, TP)
    num_p_tiles = P_pad // TP

    est_vmem = 2 * f_block_bytes + per_pixel * TP + (1 << 20)
    vmem_limit = None
    if est_vmem > 12 * 1024 * 1024:       # below every generation's default
        vmem_limit = int(min(VMEM_CEIL,
                             max(est_vmem * 3 // 2, 20 * 1024 * 1024)))

    cost = pl.CostEstimate(
        flops=2 * N * C * H_in * W_in * P + 2 * N * C * H_in * P,
        transcendentals=0,
        bytes_accessed=int(f_flat.size * f_itemsize
                           + m.size * jnp.dtype(m.dtype).itemsize
                           + N * C * P * out_itemsize))

    out_flat = pl.pallas_call(
        kernel,
        out_shape=jax.ShapeDtypeStruct((N, C, P_pad), out_dtype),
        grid=(N, num_p_tiles),
        in_specs=[
            pl.BlockSpec((1, 2, TP), lambda n, p: (n, 0, p)),
            # f block is constant along the inner p axis -> stays resident.
            pl.BlockSpec((1, f_flat.shape[1], f_flat.shape[2]),
                         lambda n, p: (n, 0, 0)),
        ],
        out_specs=pl.BlockSpec((1, C, TP), lambda n, p: (n, 0, p)),
        compiler_params=pltpu.CompilerParams(
            dimension_semantics=("parallel", "parallel"),
            vmem_limit_bytes=vmem_limit),
        cost_estimate=cost,
    )(m_flat, f_flat)

    return out_flat[:, :, :P].reshape(N, C, H_out, W_out)


def _ref_grid_sample_border(f, m):
    """Pure-JAX reference: grid_sample bilinear, border, align_corners=False."""
    N, C, H_in, W_in = f.shape
    gx = m[:, 0]
    gy = m[:, 1]
    ix = jnp.clip(((gx + 1.0) * W_in - 1.0) * 0.5, 0.0, W_in - 1.0)
    iy = jnp.clip(((gy + 1.0) * H_in - 1.0) * 0.5, 0.0, H_in - 1.0)
    x0f = jnp.floor(ix)
    y0f = jnp.floor(iy)
    wx1 = ix - x0f
    wx0 = 1.0 - wx1
    wy1 = iy - y0f
    wy0 = 1.0 - wy1
    x0 = jnp.clip(x0f.astype(jnp.int32), 0, W_in - 1)
    x1 = jnp.clip(x0 + 1, 0, W_in - 1)
    y0 = jnp.clip(y0f.astype(jnp.int32), 0, H_in - 1)
    y1 = jnp.clip(y0 + 1, 0, H_in - 1)

    def per_batch(fn, x0, x1, y0, y1, wx0, wx1, wy0, wy1):
        g = lambda yi, xi: fn[:, yi, xi]  # (C, H_out, W_out)
        return (wy0 * wx0 * g(y0, x0) + wy0 * wx1 * g(y0, x1)
                + wy1 * wx0 * g(y1, x0) + wy1 * wx1 * g(y1, x1))

    return jax.vmap(per_batch)(f, x0, x1, y0, y1, wx0, wx1, wy0, wy1)


if __name__ == "__main__":
    key = jax.random.PRNGKey(0)
    kf, km1, km2, kf2, km3 = jax.random.split(key, 5)

    N, C, H, W = 2, 4, 16, 16
    f = jax.random.normal(kf, (N, C, H, W), dtype=jnp.float32)
    # Sampling grids in [-1.2, 1.2]; values beyond +-1 exercise border clamp.
    m_same = jax.random.uniform(km1, (N, 2, H, W), dtype=jnp.float32,
                                minval=-1.2, maxval=1.2)
    m_rect = jax.random.uniform(km2, (N, 2, 8, 32), dtype=jnp.float32,
                                minval=-1.2, maxval=1.2)
    # Odd sizes: H_in not a multiple of 8, P not a multiple of 128, N == 1.
    f_odd = jax.random.normal(kf2, (1, 3, 12, 20), dtype=jnp.float32)
    m_odd = jax.random.uniform(km3, (1, 2, 6, 10), dtype=jnp.float32,
                               minval=-1.2, maxval=1.2)

    checks = [
        (f, m_same, dict()),               # separable path, auto tile
        (f, m_same, dict(tile_p=128)),     # exercise the multi-tile P grid
        (f, m_rect, dict()),               # non-square output grid
        (f, m_same, dict(path="slab")),    # large-C path exercised at small C
        (f_odd, m_odd, dict()),            # padded H / padded P / N == 1
    ]
    for fi, mi, kwargs in checks:
        out = jax.block_until_ready(warper_conv(fi, mi, **kwargs))
        ref = _ref_grid_sample_border(fi, mi)
        assert out.shape == (fi.shape[0], fi.shape[1]) + mi.shape[2:]
        err = float(jnp.max(jnp.abs(out - ref)))
        assert jnp.allclose(out, ref, atol=1e-5, rtol=1e-5), (kwargs, err)

    # bf16 MXU fast path (recommended on v6e/v7x); looser tolerance because
    # both features and bilinear weights are quantized to bf16 (~2^-8 rel).
    out_bf16 = jax.block_until_ready(warper_conv(f, m_same, use_bf16_mxu=True))
    ref = _ref_grid_sample_border(f, m_same)
    assert jnp.allclose(out_bf16, ref, atol=5e-2, rtol=5e-2), (
        float(jnp.max(jnp.abs(out_bf16 - ref))))

    print("KERNEL_OK")
</pallas_src>

<mosaic_0001>
module attributes {stable_mosaic.version = 11 : i64} {
  func.func @_warp_kernel_separable(%arg0: i32, %arg1: i32, %arg2: memref<1x2x256xf32, #tpu.memory_space<vmem>>, %arg3: memref<1x64x16xf32, #tpu.memory_space<vmem>>, %arg4: memref<1x4x256xf32, #tpu.memory_space<vmem>>) attributes {dimension_semantics = [#tpu.dimension_semantics<parallel>, #tpu.dimension_semantics<parallel>], iteration_bounds = array<i64: 2, 1>, scalar_prefetch = 0 : i64, scratch_operands = 0 : i64, tpu.core_type = #tpu.core_type<tc>, window_params = [{transform_indices = @transform_0, window_bounds = array<i64: 1, 2, 256>}, {transform_indices = @transform_1, window_bounds = array<i64: 1, 64, 16>}, {transform_indices = @transform_2, window_bounds = array<i64: 1, 4, 256>}]} {
    %c0 = arith.constant 0 : index
    %c0_0 = arith.constant 0 : index
    %c0_1 = arith.constant 0 : index
    %0 = vector.load %arg2[%c0, %c0_0, %c0_1] : memref<1x2x256xf32, #tpu.memory_space<vmem>>, vector<1x2x256xf32>
    %1 = vector.shape_cast %0 : vector<1x2x256xf32> to vector<2x256xf32>
    %2 = tpu.iota {dimensions = array<i32: 0>} : vector<2x1xi32>
    %c0_i32 = arith.constant 0 : i32
    %3 = vector.broadcast %c0_i32 : i32 to vector<2x1xi32>
    %4 = arith.cmpi eq, %2, %3 : vector<2x1xi32>
    %cst = arith.constant 1.600000e+01 : f32
    %cst_2 = arith.constant 1.600000e+01 : f32
    %5 = vector.broadcast %cst : f32 to vector<2x1xf32>
    %6 = vector.broadcast %cst_2 : f32 to vector<2x1xf32>
    %7 = arith.select %4, %5, %6 : vector<2x1xi1>, vector<2x1xf32>
    %cst_3 = arith.constant 1.000000e+00 : f32
    %8 = vector.broadcast %cst_3 : f32 to vector<2x1xf32>
    %9 = arith.subf %7, %8 : vector<2x1xf32>
    %c0_i32_4 = arith.constant 0 : i32
    %10 = vector.broadcast %c0_i32_4 : i32 to vector<2x1xi32>
    %11 = arith.cmpi eq, %2, %10 : vector<2x1xi32>
    %c15_i32 = arith.constant 15 : i32
    %c15_i32_5 = arith.constant 15 : i32
    %12 = vector.broadcast %c15_i32 : i32 to vector<2x1xi32>
    %13 = vector.broadcast %c15_i32_5 : i32 to vector<2x1xi32>
    %14 = arith.select %11, %12, %13 : vector<2x1xi1>, vector<2x1xi32>
    %cst_6 = arith.constant 1.000000e+00 : f32
    %15 = vector.broadcast %cst_6 : f32 to vector<2x256xf32>
    %16 = arith.addf %1, %15 : vector<2x256xf32>
    %17 = vector.broadcast %7 : vector<2x1xf32> to vector<2x256xf32>
    %18 = arith.mulf %16, %17 : vector<2x256xf32>
    %cst_7 = arith.constant 1.000000e+00 : f32
    %19 = vector.broadcast %cst_7 : f32 to vector<2x256xf32>
    %20 = arith.subf %18, %19 : vector<2x256xf32>
    %cst_8 = arith.constant 5.000000e-01 : f32
    %21 = vector.broadcast %cst_8 : f32 to vector<2x256xf32>
    %22 = arith.mulf %20, %21 : vector<2x256xf32>
    %cst_9 = arith.constant 0.000000e+00 : f32
    %23 = vector.broadcast %cst_9 : f32 to vector<2x256xf32>
    %24 = arith.maximumf %23, %22 : vector<2x256xf32>
    %25 = vector.broadcast %9 : vector<2x1xf32> to vector<2x256xf32>
    %26 = arith.minimumf %25, %24 : vector<2x256xf32>
    %27 = math.floor %26 : vector<2x256xf32>
    %28 = arith.subf %26, %27 : vector<2x256xf32>
    %cst_10 = arith.constant 1.000000e+00 : f32
    %29 = vector.broadcast %cst_10 : f32 to vector<2x256xf32>
    %30 = arith.subf %29, %28 : vector<2x256xf32>
    %31 = arith.fptosi %27 : vector<2x256xf32> to vector<2x256xi32>
    %c0_i32_11 = arith.constant 0 : i32
    %32 = vector.broadcast %c0_i32_11 : i32 to vector<2x256xi32>
    %33 = arith.maxsi %32, %31 : vector<2x256xi32>
    %34 = vector.broadcast %14 : vector<2x1xi32> to vector<2x256xi32>
    %35 = arith.minsi %34, %33 : vector<2x256xi32>
    %c1_i32 = arith.constant 1 : i32
    %36 = vector.broadcast %c1_i32 : i32 to vector<2x256xi32>
    %37 = arith.addi %35, %36 : vector<2x256xi32>
    %38 = vector.broadcast %14 : vector<2x1xi32> to vector<2x256xi32>
    %39 = arith.minsi %37, %38 : vector<2x256xi32>
    %40 = vector.extract_strided_slice %35 {offsets = [0, 0], sizes = [1, 256], strides = [1, 1]} : vector<2x256xi32> to vector<1x256xi32>
    %41 = vector.extract_strided_slice %39 {offsets = [0, 0], sizes = [1, 256], strides = [1, 1]} : vector<2x256xi32> to vector<1x256xi32>
    %42 = vector.extract_strided_slice %30 {offsets = [0, 0], sizes = [1, 256], strides = [1, 1]} : vector<2x256xf32> to vector<1x256xf32>
    %43 = vector.extract_strided_slice %28 {offsets = [0, 0], sizes = [1, 256], strides = [1, 1]} : vector<2x256xf32> to vector<1x256xf32>
    %44 = vector.extract_strided_slice %35 {offsets = [1, 0], sizes = [1, 256], strides = [1, 1]} : vector<2x256xi32> to vector<1x256xi32>
    %45 = vector.extract_strided_slice %39 {offsets = [1, 0], sizes = [1, 256], strides = [1, 1]} : vector<2x256xi32> to vector<1x256xi32>
    %46 = vector.extract_strided_slice %30 {offsets = [1, 0], sizes = [1, 256], strides = [1, 1]} : vector<2x256xf32> to vector<1x256xf32>
    %47 = vector.extract_strided_slice %28 {offsets = [1, 0], sizes = [1, 256], strides = [1, 1]} : vector<2x256xf32> to vector<1x256xf32>
    %48 = tpu.iota {dimensions = array<i32: 0>} : vector<16x256xi32>
    %49 = vector.broadcast %40 : vector<1x256xi32> to vector<16x256xi32>
    %50 = arith.cmpi eq, %48, %49 : vector<16x256xi32>
    %cst_12 = arith.constant 0.000000e+00 : f32
    %51 = vector.shape_cast %42 : vector<1x256xf32> to vector<1x256xf32>
    %52 = vector.broadcast %51 : vector<1x256xf32> to vector<16x256xf32>
    %53 = vector.broadcast %cst_12 : f32 to vector<16x256xf32>
    %54 = arith.select %50, %52, %53 : vector<16x256xi1>, vector<16x256xf32>
    %55 = vector.broadcast %41 : vector<1x256xi32> to vector<16x256xi32>
    %56 = arith.cmpi eq, %48, %55 : vector<16x256xi32>
    %cst_13 = arith.constant 0.000000e+00 : f32
    %57 = vector.shape_cast %43 : vector<1x256xf32> to vector<1x256xf32>
    %58 = vector.broadcast %57 : vector<1x256xf32> to vector<16x256xf32>
    %59 = vector.broadcast %cst_13 : f32 to vector<16x256xf32>
    %60 = arith.select %56, %58, %59 : vector<16x256xi1>, vector<16x256xf32>
    %61 = arith.addf %54, %60 : vector<16x256xf32>
    %c0_14 = arith.constant 0 : index
    %c0_15 = arith.constant 0 : index
    %c0_16 = arith.constant 0 : index
    %62 = vector.load %arg3[%c0_14, %c0_15, %c0_16] : memref<1x64x16xf32, #tpu.memory_space<vmem>>, vector<1x64x16xf32>
    %63 = vector.shape_cast %62 : vector<1x64x16xf32> to vector<64x16xf32>
    %cst_17 = arith.constant dense<0.000000e+00> : vector<64x256xf32>
    %64 = tpu.matmul %63, %61, %cst_17 {dimension_numbers = #tpu.dot_dimension_numbers<[1], [0], [0], [1], [0, 0, 1, 1], [], []>} : vector<64x16xf32>, vector<16x256xf32>, vector<64x256xf32> -> vector<64x256xf32>
    %65 = vector.shape_cast %64 : vector<64x256xf32> to vector<4x16x256xf32>
    %66 = tpu.iota {dimensions = array<i32: 0>} : vector<16x256xi32>
    %67 = vector.broadcast %44 : vector<1x256xi32> to vector<16x256xi32>
    %68 = arith.cmpi eq, %66, %67 : vector<16x256xi32>
    %cst_18 = arith.constant 0.000000e+00 : f32
    %69 = vector.shape_cast %46 : vector<1x256xf32> to vector<1x256xf32>
    %70 = vector.broadcast %69 : vector<1x256xf32> to vector<16x256xf32>
    %71 = vector.broadcast %cst_18 : f32 to vector<16x256xf32>
    %72 = arith.select %68, %70, %71 : vector<16x256xi1>, vector<16x256xf32>
    %73 = vector.broadcast %45 : vector<1x256xi32> to vector<16x256xi32>
    %74 = arith.cmpi eq, %66, %73 : vector<16x256xi32>
    %cst_19 = arith.constant 0.000000e+00 : f32
    %75 = vector.shape_cast %47 : vector<1x256xf32> to vector<1x256xf32>
    %76 = vector.broadcast %75 : vector<1x256xf32> to vector<16x256xf32>
    %77 = vector.broadcast %cst_19 : f32 to vector<16x256xf32>
    %78 = arith.select %74, %76, %77 : vector<16x256xi1>, vector<16x256xf32>
    %79 = arith.addf %72, %78 : vector<16x256xf32>
    %80 = vector.shape_cast %79 : vector<16x256xf32> to vector<1x16x256xf32>
    %81 = vector.broadcast %80 : vector<1x16x256xf32> to vector<4x16x256xf32>
    %82 = arith.mulf %65, %81 : vector<4x16x256xf32>
    %cst_20 = arith.constant dense<0.000000e+00> : vector<4x256xf32>
    %83 = vector.multi_reduction <add>, %82, %cst_20 [1] : vector<4x16x256xf32> to vector<4x256xf32>
    %c0_21 = arith.constant 0 : index
    %c0_22 = arith.constant 0 : index
    %c0_23 = arith.constant 0 : index
    %84 = vector.load %arg4[%c0_21, %c0_22, %c0_23] : memref<1x4x256xf32, #tpu.memory_space<vmem>>, vector<1x4x256xf32>
    %85 = vector.shape_cast %84 : vector<1x4x256xf32> to vector<4x256xf32>
    %86 = vector.shape_cast %83 : vector<4x256xf32> to vector<1x4x256xf32>
    tpu.vector_store %arg4[%c0_21, %c0_22, %c0_23], %86 {strides = array<i32>} : memref<1x4x256xf32, #tpu.memory_space<vmem>>, vector<1x4x256xf32>,
    return
  }
  func.func @transform_0(%arg0: i32, %arg1: i32) -> (i32, i32, i32) {
    %c0_i32 = arith.constant 0 : i32
    %c0_i32_0 = arith.constant 0 : i32
    return %arg0, %c0_i32, %arg1 : i32, i32, i32
  }
  func.func @transform_1(%arg0: i32, %arg1: i32) -> (i32, i32, i32) {
    %c0_i32 = arith.constant 0 : i32
    %c0_i32_0 = arith.constant 0 : i32
    %c0_i32_1 = arith.constant 0 : i32
    return %arg0, %c0_i32, %c0_i32_0 : i32, i32, i32
  }
  func.func @transform_2(%arg0: i32, %arg1: i32) -> (i32, i32, i32) {
    %c0_i32 = arith.constant 0 : i32
    %c0_i32_0 = arith.constant 0 : i32
    return %arg0, %c0_i32, %arg1 : i32, i32, i32
  }
}

</mosaic_0001>

<bundles_post_ra>
// kernel: tpu_custom_call.1
= control target key start
LH: loop header
LB: loop body
LE: loop exit
PB: predicated region body
PF: predicated region fallthrough
CT: control target
= control target key end

     0   :  { %7 = vsyncpa [#allocation3], 0  ;;  %s1111_s0 = inlined_call_operand.vmem [shape: f32[2,2,256], index: 0, kind: input, shape index: {}]   ;;  %s1112_s1 = inlined_call_operand.vmem [shape: f32[2,64,16], index: 1, kind: input, shape index: {}]   ;;  %s1113_s2 = inlined_call_operand.hbm [shape: f32[2,4,256], index: 2, kind: output, shape index: {}]  }
   0x1   :  { %9 = vsyncpa [#allocation3 + $0x1], 0  ;;  %s928_s9 = smov 0   ;;  %s930_s10 = smov 0  }
   0x2   :  { %s932_s11 = smov 0   ;;  %s934_s12 = smov 0  }
   0x3   :  { %s936_s13 = smov 0   ;;  %s938_s14 = smov 0  }
   0x4 LB: > { %s744_s15 = sadd.s32 4294967295, %s909_s14   ;;  %s745_s16 = sadd.s32 4294967294, %s909_s14   ;;  %s909_s14 = sphi %s938_s14, %s15_s14   ;;  %s905_s13 = sphi %s936_s13, %s1120_s13   ;;  %s901_s12 = sphi %s934_s12, %s1119_s12   ;;  %s897_s11 = sphi %s932_s11, %s1118_s11   ;;  %s893_s10 = sphi %s930_s10, %s1117_s10   ;;  %s889_s9 = sphi %s928_s9, %s1116_s9  }
   0x5   : > { %s27_s17 = sadd.s32 1, %s905_s13  ;;  %s90_s18 = sadd.s32 1, %s897_s11 }
   0x6   : > { %p29_p0 = scmp.ge.s32.totalorder %s27_s17, 2  ;;  %p100_p1 = scmp.ne.s32.totalorder %s897_s11, %s893_s10 }
   0x7   : > { %p101_p2 = scmp.eq.s32.totalorder %s744_s15, 1  ;;  %p106_p3 = scmp.ne.s32.totalorder %s893_s10, %s889_s9 }
   0x8   : > { %s1122_s17 = smov (%p29_p0, %s27_s17), 0  ;;  %p107_p5 = scmp.eq.s32.totalorder %s745_s16, 1 }
   0x9   : > { %p968_p4 = por %p101_p2, %p100_p1  ;;  %s85_s20 = ssub.s32 %s905_s13, %s1122_s17 }
   0xa   : > { %p748_p6 = scmp.ge.s32.totalorder %s909_s14, 1  ;;  %p88_p7 = scmp.eq.s32.totalorder %s85_s20, 0 }
   0xb   : > { %p975_p8 = por %p107_p5, %p106_p3  ;;  %p146_p9 = scmp.lt.s32.totalorder %s909_s14, 3 }
   0xc   : > { %s981_s22 = scalar_select %p88_p7, %s897_s11, %s90_s18  }
   0xd   : > { %p147_p10 = pnand %p748_p6, %p146_p9 }
   0xe   : > { %p178_p11 = scmp.lt.s32.totalorder (!%p147_p10), %s901_s12, 1  ;;  %s174_s4 = sand.u32 (!%p147_p10), 1, %s893_s10  }
   0xf   : > { %150 = sbr.rel (%p147_p10) target bundleno = 309 (0x135), region = 28  ;;  %s749_s5 = sshll.u32 (!%p147_p10), %s174_s4, 3 }
  0x10   : > { %s770_s6 = sshll.u32 (!%p147_p10), %s901_s12, 7  ;;  %s176_s7 = scalar_lea.vmem (!%p147_p10), [#allocation2], %s749_s5 }
  0x11   : > { %s656_s8 = sshll.u32 (!%p147_p10), %s176_s7, 4  ;;  %s1069_s18 = scalar_lea.hbm (!%p147_p10), %s1113_s2, %s770_s6  ;;  %s657_s8 = int_to_ptr.vmem [resolvable:$true] %s656_s8 }
  0x12   : > { %s640_s20 = scalar_lea.sflag (!%p147_p10), [#allocation3], %s174_s4 }
  0x14   : > { %v911_v0 = vmov 0.0   ;;  %s987_s23 = scalar_select %p178_p11, %s901_s12, 1  ;;  %v211_v7 = vlaneseq  ;;  %vm312_vm11 = vcmask 130048  }
  0x15   : > { %401 = vmatprep.mubr.f32.mxu0 %v911_v0  ;;  %425 = vmatprep.mubr.f32.mxu1 %v911_v0  ;;  %s912_s12 = smov [#allocation2]  }
  0x16   : > { %s768_s24 = sshll.u32 %s987_s23, 2  ;;  %v993_v10 = vshrl.u32 %v211_v7, 7  ;;  %s769_s28 = sshll.u32 %s987_s23, 6 }
  0x17   : > { %s185_s27 = scalar_lea.vmem %s1111_s0, %s768_s24  ;;  %s191_s3 = scalar_lea.vmem %s1112_s1, %s769_s28 }
  0x18   : > { %v193_v1 = vld [vmem:[%s185_s27] sm:$0xf]  ;;  %v216_v15 = vsub.s32 0, %v993_v10  ;;  %v220_v16 = vsub.s32 2, %v993_v10  ;;  %v1008_v22 = vadd.s32 8, %v993_v10  ;;  %v305_v52 = vld [vmem:[%s191_s3 + $0x8] sm:$0xff] }
  0x19   : > { %v194_v2 = vadd.f32 1.0, %v193_v1  ;;  %v304_v50 = vld [vmem:[%s191_s3] sm:$0xff]  ;;  %v309_v53 = vld [vmem:[%s191_s3 + $0x28] sm:$0xff]  ;;  %v306_v54 = vld [vmem:[%s191_s3 + $0x10] sm:$0xff]  ;;  %v452_v58 = vsub.s32 1, %v993_v10  ;;  %v456_v59 = vsub.s32 3, %v993_v10 }
  0x1a   : > { %v308_v51 = vld [vmem:[%s191_s3 + $0x20] sm:$0xff]  ;;  %v310_v55 = vld [vmem:[%s191_s3 + $0x30] sm:$0xff]  ;;  %v307_v56 = vld [vmem:[%s191_s3 + $0x18] sm:$0xff]  ;;  %s833_s23 = scalar_lea.vmem %s657_s8, 128  ;;  %s837_s24 = sshll.u32 %s912_s12, 4  ;;  %s838_s24 = int_to_ptr.vmem [resolvable:$false] %s837_s24 }
  0x1b   : > { %v195_v3 = vmul.f32 16.0, %v194_v2  ;;  %v311_v57 = vld [vmem:[%s191_s3 + $0x38] sm:$0xff]  ;;  %p834_p12 = scmp.ne.s32.totalorder %s657_s8, %s833_s23  ;;  %s839_s25 = scalar_lea.vmem %s838_s24, 256 }
  0x1c   : > { %p840_p1 = scmp.lt.s32.totalorder %s657_s8, %s838_s24  ;;  %p841_p2 = scmp.lt.s32.totalorder %s839_s25, %s833_s23 }
  0x1d   : > { %v754_v4 = vadd.f32 -1.0, %v195_v3  ;;  %p835_p13 = pnand %p834_p12, %p968_p4 }
  0x1e   : > { %p842_p3 = por %p841_p2, %p840_p1 }
  0x1f   : > { %v197_v5 = vmul.f32 0.5, %v754_v4  ;;  %p836_p0 = pneg %p835_p13 }
  0x21   : > { %v198_v6 = vmax.f32 %v197_v5, 0.0  ;;  %p843_p5 = pnand %p842_p3, %p836_p0 }
  0x23   : > { %v199_v8 = vmin.f32 %v198_v6, 15.0 }
  0x25   : > { %v200_v9 = vfloor.f32 %v199_v8 }
  0x27   : > { %v995_v11 = vsub.f32 %v199_v8, %v200_v9  ;;  %v775_v12 = vtrunc.f32 %v200_v9 }
  0x29   : > { %v776_v13 = vcvt.f32.s32 %v775_v12  ;;  %v998_v14 = vsub.f32 1.0, %v995_v11  ;;  %v285_v25 = vrot.slane %v995_v11, %v220_v16  ;;  %v281_v26 = vrot.slane %v995_v11, %v216_v15 }
  0x2a   : > { %v515_v3 = vrot.slane %v995_v11, %v452_v58  ;;  %v519_v5 = vrot.slane %v995_v11, %v456_v59 }
  0x2b   : > { %vm204_vm0 = vcmp.gt.s32.totalorder %v776_v13, 0  ;;  %v242_v19 = vrot.slane %v998_v14, %v220_v16  ;;  %v238_v20 = vrot.slane %v998_v14, %v216_v15  ;;  %v295_v34 = vrot.slane %v285_v25, %v216_v15 }
  0x2c   : > { %v205_v17 = vsel %vm204_vm0, %v776_v13, 0  ;;  %v291_v35 = vrot.slane %v281_v26, %v216_v15  ;;  %v477_v4 = vrot.slane %v998_v14, %v456_v59  ;;  %v525_v9 = vrot.slane %v515_v3, %v452_v58 }
  0x2d   : > { %vm206_vm1 = vcmp.lt.s32.totalorder %v205_v17, 15  ;;  %v252_v30 = vrot.slane %v242_v19, %v216_v15  ;;  %v248_v31 = vrot.slane %v238_v20, %v216_v15  ;;  %v529_v13 = vrot.slane %v519_v5, %v452_v58 }
  0x2e   : > { %v1002_v18 = vsel %vm206_vm1, %v205_v17, 15  ;;  %v487_v12 = vrot.slane %v477_v4, %v452_v58 }
  0x2f   : > { %v208_v21 = vadd.s32 1, %v1002_v18  ;;  %v221_v23 = vrot.slane %v1002_v18, %v220_v16  ;;  %v217_v24 = vrot.slane %v1002_v18, %v216_v15  ;;  %v453_v60 = vrot.slane %v1002_v18, %v452_v58 }
  0x30   : > { %v457_v62 = vrot.slane %v1002_v18, %v456_v59 }
  0x31   : > { %vm209_vm2 = vcmp.lt.s32.totalorder %v208_v21, 15  ;;  %v229_v27 = vrot.slane %v221_v23, %v216_v15  ;;  %v225_v28 = vrot.slane %v217_v24, %v216_v15  ;;  %v461_v1 = vrot.slane %v453_v60, %v452_v58 }
  0x32   : > { %v1014_v29 = vsel %vm209_vm2, %v208_v21, 15  ;;  %v465_v6 = vrot.slane %v457_v62, %v452_v58 }
  0x33   : > { %vm233_vm3 = vcmp.eq.s32.totalorder %v1008_v22, %v229_v27  ;;  %v264_v32 = vrot.slane %v1014_v29, %v220_v16  ;;  %vm232_vm4 = vcmp.eq.s32.totalorder %v1008_v22, %v225_v28  ;;  %v260_v33 = vrot.slane %v1014_v29, %v216_v15 }
  0x34   : > { %vm231_vm5 = vcmp.eq.s32.totalorder %v993_v10, %v229_v27  ;;  %vm230_vm6 = vcmp.eq.s32.totalorder %v993_v10, %v225_v28  ;;  %v256_v38 = vsel %vm233_vm3, %v252_v30, 0.0  ;;  %v255_v39 = vsel %vm232_vm4, %v248_v31, 0.0 }
  0x35   : > { %v272_v36 = vrot.slane %v264_v32, %v216_v15  ;;  %v268_v37 = vrot.slane %v260_v33, %v216_v15  ;;  %v254_v40 = vsel %vm231_vm5, %v252_v30, 0.0  ;;  %v253_v41 = vsel %vm230_vm6, %v248_v31, 0.0 }
  0x36   : > { %v495_v61 = vrot.slane %v1014_v29, %v452_v58  ;;  %v499_v63 = vrot.slane %v1014_v29, %v456_v59  ;;  %vm466_vm12 = vcmp.eq.s32.totalorder %v993_v10, %v461_v1  ;;  %vm468_vm14 = vcmp.eq.s32.totalorder %v1008_v22, %v461_v1 }
  0x37   : > { %vm276_vm7 = vcmp.eq.s32.totalorder %v1008_v22, %v272_v36  ;;  %vm275_vm8 = vcmp.eq.s32.totalorder %v1008_v22, %v268_v37  ;;  %vm274_vm9 = vcmp.eq.s32.totalorder %v993_v10, %v272_v36  ;;  %vm273_vm10 = vcmp.eq.s32.totalorder %v993_v10, %v268_v37 }
  0x38   : > { %v299_v42 = vsel %vm276_vm7, %v295_v34, 0.0  ;;  %v298_v43 = vsel %vm275_vm8, %v291_v35, 0.0  ;;  %v297_v44 = vsel %vm274_vm9, %v295_v34, 0.0  ;;  %v296_v45 = vsel %vm273_vm10, %v291_v35, 0.0 }
  0x39   : > { %v303_v46 = vadd.f32 %v299_v42, %v256_v38  ;;  %v302_v47 = vadd.f32 %v298_v43, %v255_v39  ;;  %v301_v48 = vadd.f32 %v297_v44, %v254_v40  ;;  %v300_v49 = vadd.f32 %v296_v45, %v253_v41 }
  0x3a   : > { %v503_v2 = vrot.slane %v495_v61, %v452_v58  ;;  %v507_v7 = vrot.slane %v499_v63, %v452_v58  ;;  %vm467_vm0 = vcmp.eq.s32.totalorder %v993_v10, %v465_v6  ;;  %vm469_vm2 = vcmp.eq.s32.totalorder %v1008_v22, %v465_v6 }
  0x3b   : > { %365 = vmatprep.subr.mxu0 %v303_v46  ;;  %771 = vmatprep.subr.mxu1 %v303_v46  ;;  %v489_v17 = vsel %vm467_vm0, %v487_v12, 0.0  ;;  %v491_v21 = vsel %vm469_vm2, %v487_v12, 0.0  ;;  %vm623_vm4 = vcmask 1041409   ;;  %vm625_vm5 = vcmask 1045509  }
  0x3c   : > { %366 = vmatpush1.msra.mxu0 %v302_v47  ;;  %773 = vmatpush1.msra.mxu1 %v302_v47  ;;  %vm508_vm13 = vcmp.eq.s32.totalorder %v993_v10, %v503_v2  ;;  %vm510_vm15 = vcmp.eq.s32.totalorder %v1008_v22, %v503_v2  ;;  %vm509_vm1 = vcmp.eq.s32.totalorder %v993_v10, %v507_v7  ;;  %vm628_vm6 = vcmask 1042434  }
  0x3d   : > { %367 = vmatprep.subr.mxu0 %v301_v48  ;;  %772 = vmatprep.subr.mxu1 %v301_v48  ;;  %vm511_vm3 = vcmp.eq.s32.totalorder %v1008_v22, %v507_v7  ;;  %v532_v16 = vsel %vm510_vm15, %v525_v9, 0.0  ;;  %v531_v18 = vsel %vm509_vm1, %v529_v13, 0.0  ;;  %vm630_vm7 = vcmask 1046534  }
  0x3e   : > { %368 = vmatpush1.msra.mxu0 %v300_v49  ;;  %774 = vmatpush1.msra.mxu1 %v300_v49  ;;  %v533_v23 = vsel %vm511_vm3, %v529_v13, 0.0  ;;  %v535_v27 = vadd.f32 %v531_v18, %v489_v17  ;;  %vm633_vm8 = vcmask 1043459   ;;  %vm635_vm9 = vcmask 1047559  }
  0x3f   : > { %755 = vmatmul.mubr.msk.f32.vlgmr.msra.gmra.mxu0 %vm312_vm11, %v304_v50  ;;  %759 = vmatmul.mubr.msk.f32.vlgmr.msra.gmra.mxu1 %vm312_vm11, %v308_v51  ;;  %v537_v29 = vadd.f32 %v533_v23, %v491_v21 }
  0x40   : > { %407 = vmatprep.mubr.f32.mxu0 %v911_v0  ;;  %431 = vmatprep.mubr.f32.mxu1 %v911_v0 }
  0x43   : > { %756 = vmatmul.mubr.msk.f32.gmra.mxu0 %vm312_vm11, %v305_v52  ;;  %760 = vmatmul.mubr.msk.f32.gmra.mxu1 %vm312_vm11, %v309_v53 }
  0x44   : > { %413 = vmatprep.mubr.f32.mxu0 %v911_v0  ;;  %437 = vmatprep.mubr.f32.mxu1 %v911_v0 }
  0x47   : > { %757 = vmatmul.mubr.msk.f32.gmra.mxu0 %vm312_vm11, %v306_v54  ;;  %761 = vmatmul.mubr.msk.f32.gmra.mxu1 %vm312_vm11, %v310_v55 }
  0x48   : > { %419 = vmatprep.mubr.f32.mxu0 %v911_v0  ;;  %443 = vmatprep.mubr.f32.mxu1 %v911_v0  ;;  %v473_v0 = vrot.slane %v998_v14, %v452_v58  ;;  %v530_v14 = vsel %vm508_vm13, %v525_v9, 0.0 }
  0x4a   : > { %v483_v8 = vrot.slane %v473_v0, %v452_v58 }
  0x4b   : > { %758 = vmatmul.mubr.msk.f32.gmra.mxu0 %vm312_vm11, %v307_v56  ;;  %762 = vmatmul.mubr.msk.f32.gmra.mxu1 %vm312_vm11, %v311_v57 }
  0x4c   : > { %v488_v11 = vsel %vm466_vm12, %v483_v8, 0.0  ;;  %v490_v15 = vsel %vm468_vm14, %v483_v8, 0.0 }
  0x4d   : > { %v534_v24 = vadd.f32 %v530_v14, %v488_v11  ;;  %v536_v25 = vadd.f32 %v532_v16, %v490_v15 }
  0xff   : > { %v403_v19 = vpop.f32.mrf.mxu0  ;;  %v427_v20 = vpop.f32.mrf.mxu1 }
 0x100   : > { %v546_v10 = vmul.f32 %v534_v24, %v427_v20  ;;  %v538_v22 = vmul.f32 %v534_v24, %v403_v19 }
 0x101   : > { %v405_v26 = vpop.f32.mrf.mxu0  ;;  %v429_v28 = vpop.f32.mrf.mxu1 }
 0x102   : > { %v539_v34 = vmul.f32 %v535_v27, %v405_v26  ;;  %v547_v35 = vmul.f32 %v535_v27, %v429_v28 }
 0x103   : > { %v409_v30 = vpop.f32.mrf.mxu0  ;;  %v433_v31 = vpop.f32.mrf.mxu1 }
 0x104   : > { %v540_v32 = vmul.f32 %v536_v25, %v409_v30  ;;  %v548_v33 = vmul.f32 %v536_v25, %v433_v31 }
 0x105   : > { %v411_v36 = vpop.f32.mrf.mxu0  ;;  %v435_v37 = vpop.f32.mrf.mxu1 }
 0x106   : > { %v554_v38 = vadd.f32 %v540_v32, %v538_v22  ;;  %v582_v39 = vadd.f32 %v548_v33, %v546_v10  ;;  %v541_v40 = vmul.f32 %v537_v29, %v411_v36  ;;  %v549_v41 = vmul.f32 %v537_v29, %v435_v37 }
 0x107   : > { %v415_v42 = vpop.f32.mrf.mxu0  ;;  %v439_v43 = vpop.f32.mrf.mxu1 }
 0x108   : > { %v583_v44 = vrot.slane %v582_v39, 4  ;;  %v561_v45 = vadd.f32 %v541_v40, %v539_v34  ;;  %v589_v46 = vadd.f32 %v549_v41, %v547_v35  ;;  %v555_v49 = vrot.slane %v554_v38, 4 }
 0x109   : > { %v417_v47 = vpop.f32.mrf.mxu0  ;;  %v441_v48 = vpop.f32.mrf.mxu1  ;;  %v550_v52 = vmul.f32 %v534_v24, %v439_v43  ;;  %v542_v58 = vmul.f32 %v534_v24, %v415_v42 }
 0x10a   : > { %v562_v50 = vrot.slane %v561_v45, 4  ;;  %v590_v51 = vrot.slane %v589_v46, 4  ;;  %v584_v55 = vadd.f32 %v583_v44, %v582_v39  ;;  %v556_v63 = vadd.f32 %v555_v49, %v554_v38 }
 0x10b   : > { %v421_v53 = vpop.f32.mrf.mxu0  ;;  %v445_v54 = vpop.f32.mrf.mxu1  ;;  %v543_v0 = vmul.f32 %v535_v27, %v417_v47  ;;  %v551_v2 = vmul.f32 %v535_v27, %v441_v48 }
 0x10c   : > { %v563_v56 = vadd.f32 %v562_v50, %v561_v45  ;;  %v591_v57 = vadd.f32 %v590_v51, %v589_v46  ;;  %v544_v59 = vmul.f32 %v536_v25, %v421_v53  ;;  %v552_v60 = vmul.f32 %v536_v25, %v445_v54 }
 0x10d   : > { %v423_v61 = vpop.f32.mrf.mxu0  ;;  %v447_v62 = vpop.f32.mrf.mxu1  ;;  %v585_v7 = vrot.slane %v584_v55, 2  ;;  %v557_v14 = vrot.slane %v556_v63, 2 }
 0x10e   : > { %v592_v1 = vrot.slane %v591_v57, 2  ;;  %v568_v3 = vadd.f32 %v544_v59, %v542_v58  ;;  %v596_v4 = vadd.f32 %v552_v60, %v550_v52  ;;  %v545_v5 = vmul.f32 %v537_v29, %v423_v61 }
 0x10f   : > { %v553_v6 = vmul.f32 %v537_v29, %v447_v62  ;;  %v564_v8 = vrot.slane %v563_v56, 2  ;;  %v586_v20 = vadd.f32 %v585_v7, %v584_v55  ;;  %v558_v27 = vadd.f32 %v557_v14, %v556_v63 }
 0x110   : > { %v569_v9 = vrot.slane %v568_v3, 4  ;;  %v597_v12 = vrot.slane %v596_v4, 4  ;;  %v575_v13 = vadd.f32 %v545_v5, %v543_v0  ;;  %v593_v15 = vadd.f32 %v592_v1, %v591_v57 }
 0x111   : > { %v603_v11 = vadd.f32 %v553_v6, %v551_v2  ;;  %v565_v21 = vadd.f32 %v564_v8, %v563_v56  ;;  %v587_v22 = vrot.slane %v586_v20, 1  ;;  %v559_v36 = vrot.slane %v558_v27, 1 }
 0x112   : > { %v570_v16 = vadd.f32 %v569_v9, %v568_v3  ;;  %v598_v17 = vadd.f32 %v597_v12, %v596_v4  ;;  %v576_v18 = vrot.slane %v575_v13, 4  ;;  %v594_v28 = vrot.slane %v593_v15, 1 }
 0x113   : > { %v604_v19 = vrot.slane %v603_v11, 4  ;;  %v566_v32 = vrot.slane %v565_v21, 1  ;;  %v588_v41 = vadd.f32 %v587_v22, %v586_v20  ;;  %v560_v46 = vadd.f32 %v559_v36, %v558_v27 }
 0x114   : > { %v571_v23 = vrot.slane %v570_v16, 2  ;;  %v599_v24 = vrot.slane %v598_v17, 2  ;;  %v577_v25 = vadd.f32 %v576_v18, %v575_v13  ;;  %v595_v37 = vadd.f32 %v594_v28, %v593_v15 }
 0x115   : > { %v605_v26 = vadd.f32 %v604_v19, %v603_v11  ;;  %v567_v42 = vadd.f32 %v566_v32, %v565_v21 }
 0x116   : > { %v572_v10 = vadd.f32 %v571_v23, %v570_v16  ;;  %v600_v29 = vadd.f32 %v599_v24, %v598_v17  ;;  %v578_v30 = vrot.slane %v577_v25, 2  ;;  %v620_v47 = vcombine.low %v588_v41, %v595_v37 }
 0x117   : > { %v606_v31 = vrot.slane %v605_v26, 2  ;;  %v618_v50 = vcombine.low %v560_v46, %v567_v42 }
 0x118   : > { %v573_v33 = vrot.slane %v572_v10, 1  ;;  %v579_v34 = vadd.f32 %v578_v30, %v577_v25  ;;  %v601_v38 = vrot.slane %v600_v29, 1  ;;  %v627_v53 = vrot.slane %v620_v47, 6 }
 0x119   : > { %v607_v35 = vadd.f32 %v606_v31, %v605_v26 }
 0x11a   : > { %v580_v39 = vrot.slane %v579_v34, 1  ;;  %v574_v43 = vadd.f32 %v573_v33, %v572_v10  ;;  %v602_v48 = vadd.f32 %v601_v38, %v600_v29 }
 0x11b   : > { %v608_v40 = vrot.slane %v607_v35, 1 }
 0x11c   : > { %v581_v44 = vadd.f32 %v580_v39, %v579_v34 }
 0x11d   : > { %v609_v45 = vadd.f32 %v608_v40, %v607_v35 }
 0x11e   : > { %v619_v49 = vcombine.low %v574_v43, %v581_v44 }
 0x11f   : > { %v621_v52 = vcombine.low %v602_v48, %v609_v45 }
 0x120   : > { %v622_v51 = vrot.slane %v619_v49, 7 }
 0x121   : > { %v632_v57 = vrot.slane %v621_v52, 5 }
 0x122   : > { %v624_v54 = vsel %vm623_vm4, %v622_v51, %v618_v50 }
 0x123   : > { %v626_v55 = vsel %vm625_vm5, %v622_v51, %v624_v54 }
 0x124   : > { %v629_v56 = vsel %vm628_vm6, %v627_v53, %v626_v55 }
 0x125   : > { %v631_v58 = vsel %vm630_vm7, %v627_v53, %v629_v56 }
 0x126   : > { %v634_v59 = vsel %vm633_vm8, %v632_v57, %v631_v58 }
 0x127   : > { %v636_v60 = vsel %vm635_vm9, %v632_v57, %v634_v59 }
 0x128   : > { %638 = vst [vmem:[%s176_s7] sm:$0xff] %v636_v60 }
 0x129   : > { %846 = shalt.err (!%p843_p5)
}
 0x12a   : > { %s847_s26 = scalar_lea.hbm %s1069_s18, 128  ;;  %s851_s29 = scalar_lea.hbm %s1113_s2, 256 }
 0x12b   : > { %p848_p6 = scmp.ne.s32.totalorder %s1069_s18, %s847_s26  ;;  %p852_p10 = scmp.lt.s32.totalorder %s1069_s18, %s1113_s2 }
 0x12c   : > { %p853_p11 = scmp.lt.s32.totalorder %s851_s29, %s847_s26 }
 0x12d   : > { %p849_p7 = pnand %p848_p6, %p968_p4 }
 0x12e   : > { %p854_p12 = por %p853_p11, %p852_p10 }
 0x12f   : > { %p850_p9 = pneg %p849_p7 }
 0x131   : > { %p855_p13 = pnand %p854_p12, %p850_p9 }
 0x133   : > { %858 = shalt.err (!%p855_p13)
}
 0x134   : > { %777 = dma.vmem_to_hbm [thread:$0]  (%p968_p4), %s657_s8, 128, %s1069_s18, %s640_s20  }
 0x135 PF: > { %p783_p0 = scmp.ge.s32.totalorder %s909_s14, 2  ;;  %s668_s4 = sand.u32 1, %s889_s9  }
 0x136   : > { %s669_s5 = scalar_lea.sflag [#allocation3], %s668_s4 }
 0x137   : > { %p780_p1 = pnand %p783_p0, %p975_p8 }
 0x139   : > { %p781_p2 = pneg %p780_p1 }
 0x13b   : > { %884 = dma.done.wait (%p781_p2), %s669_s5, 128  }
 0x13c   : > { %886 = vsyncadd (%p781_p2), %s669_s5, 4294967168  ;;  %s15_s14 = sadd.s32 1, %s909_s14   ;;  %s1116_s9 = smov %s893_s10 }
 0x13d   : > { %p12_p3 = scmp.ge.s32.totalorder %s15_s14, 4   ;;  %s1117_s10 = smov %s897_s11 }
 0x13e   : > { %s1118_s11 = smov %s981_s22  ;;  %s1119_s12 = smov %s905_s13 }
 0x13f   : > { %s1120_s13 = smov %s1122_s17  ;;  %14 = sbr.rel (!%p12_p3) target bundleno = 4 (0x4), region = 66 }
 0x144   :  { %674 = vsyncpa [#allocation3], 1 }
 0x145   :  { %676 = vsyncpa [#allocation3 + $0x1], 1 }

</bundles_post_ra>
